<compile_context>
chip_gen: v7x
topology: tpu7x:2x2x1
jax: 0.10.0
libtpu: 0.0.40
codegen_flags: <defaults>
</compile_context>

<pallas_src>
import jax
import jax.numpy as jnp
from jax.experimental import pallas as pl
from jax.experimental.pallas import tpu as pltpu

# ---- module constants (Layer1.__init__) -------------------------------------
D = 9            # self.d / self.N
NPATCH = 6       # self.Npatch
GAMMA = 1.3
BETA = 2.0
SCALE = 255.0
L = 1.0
H_OFF = 0.2222   # off-diagonal of H; diagonal = H_OFF + 1.0 = 1.2222
B_CONST = 0.01   # every entry of b

# Max sublane rows per tile: 3 arrays x 2 buffers x 9*768*128*4 B ~= 20.25 MiB of VMEM buffers.
_S_CAP = 768
_VMEM_LIMIT_BYTES = 40 * 1024 * 1024


def _round_up(x, m):
    return ((x + m - 1) // m) * m


def _layer1_kernel(x_ref, yy_ref, xim_ref):
    x = x_ref[...]                                        # (D, S_TILE, 128)
    # x[x == 0] = 1e-6   (functional form of the in-place PyTorch masking)
    x = jnp.where(x == 0.0, jnp.float32(1e-6), x)

    # yy = L * x with L == 1.0: multiply elided (pure rename), semantics unchanged.
    yy = x

    # e = yy ** gamma written as exp(gamma * log(yy)): two EUP ops.
    # (NaN for yy < 0, exactly like torch pow with a non-integer exponent; zero inputs
    #  were already replaced by 1e-6 so log is finite.)
    e = jnp.exp(jnp.float32(GAMMA) * jnp.log(yy))
    # TODO(synk): elog = torch.log(y) in the PyTorch forward is dead code (never returned).

    # H = H_OFF*ones(9,9) + I  =>  H @ e        = H_OFF*colsum(e) + e   (VPU only, no MXU)
    #                              ones(9,9)@ e = colsum(e) broadcast over rows
    col_sum = jnp.sum(e, axis=0, keepdims=True)           # (1, S_TILE, 128)

    # Reduced-shape arithmetic before broadcasting to full shape.
    denom = (jnp.float32(B_CONST) + jnp.float32(H_OFF) * col_sum) + e
    k = jnp.float32(SCALE) * (
        jnp.float32(B_CONST + 1.0) + jnp.float32(BETA / D) * col_sum
    )                                                     # (1, S_TILE, 128)

    # EUP approx reciprocal + one Newton-Raphson step (~1 ulp f32), avoids a slow full divide.
    inv = pl.reciprocal(denom, approx=True)
    inv = inv * (jnp.float32(2.0) - denom * inv)

    yy_ref[...] = yy
    xim_ref[...] = (k * e) * inv


def layer1_forward_batched(x):
    """x: (D, NPATCH, B) f32 — B independent patches stacked along the last axis.

    Returns (yy, xim), each (D, NPATCH, B).
    """
    d, npatch, batch = x.shape
    assert (d, npatch) == (D, NPATCH)

    # Flatten (NPATCH, B) onto a single axis, then lay it out as (sublane_rows, 128 lanes).
    m = npatch * batch
    xf = x.reshape(D, m)

    # Sublane rows needed, rounded up to full (8,128) tiles.
    s_needed = _round_up(max(pl.cdiv(m, 128), 8), 8)

    if s_needed <= 16:
        # Tiny problem (e.g. the single (9, 6) sample): one block, no grid bookkeeping.
        n_tiles, s_tile = 1, s_needed
    else:
        # At least 2 grid tiles (megacore sharding + DMA/compute overlap on v7x),
        # each capped so the double-buffered working set stays comfortably in VMEM.
        s_tile = min(_S_CAP, _round_up(pl.cdiv(s_needed, 2), 8))
        n_tiles = pl.cdiv(s_needed, s_tile)

    s_pad = n_tiles * s_tile
    m_pad = s_pad * 128
    if m_pad != m:
        # Zero padding: zeros become 1e-6 in-kernel (finite math), padded lanes sliced off below.
        xf = jnp.pad(xf, ((0, 0), (0, m_pad - m)))
    x3 = xf.reshape(D, s_pad, 128)

    out_shape = (
        jax.ShapeDtypeStruct((D, s_pad, 128), jnp.float32),
        jax.ShapeDtypeStruct((D, s_pad, 128), jnp.float32),
    )

    if n_tiles == 1:
        yy3, xim3 = pl.pallas_call(_layer1_kernel, out_shape=out_shape)(x3)
    else:
        spec = pl.BlockSpec((D, s_tile, 128), lambda i: (0, i, 0))
        yy3, xim3 = pl.pallas_call(
            _layer1_kernel,
            out_shape=out_shape,
            grid=(n_tiles,),
            in_specs=[spec],
            out_specs=(spec, spec),
            compiler_params=pltpu.CompilerParams(
                dimension_semantics=("parallel",),       # v7x: shard tiles across both TCs
                vmem_limit_bytes=_VMEM_LIMIT_BYTES,      # headroom over v5e's 16 MiB default
            ),
        )(x3)

    yy = yy3.reshape(D, m_pad)[:, :m].reshape(D, npatch, batch)
    xim = xim3.reshape(D, m_pad)[:, :m].reshape(D, npatch, batch)
    return yy, xim


def layer1_forward(x):
    """Exact module signature: x (9, 6) -> (yy, xim), each (9, 6)."""
    yy, xim = layer1_forward_batched(x[..., None])
    return yy[..., 0], xim[..., 0]


# ---- pure-JAX reference mirroring the PyTorch forward (with explicit H, b) ----
def _reference_batched(x):
    h = jnp.full((D, D), H_OFF, jnp.float32)
    h = h.at[jnp.arange(D), jnp.arange(D)].set(H_OFF + 1.0)
    b = jnp.full((D, NPATCH), B_CONST, jnp.float32)
    x = jnp.where(x == 0.0, 1e-6, x)
    yy = L * x
    e = yy ** GAMMA
    denom = b[..., None] + jnp.einsum("ij,jpb->ipb", h, e)
    all1 = jnp.ones((D, D), jnp.float32)
    k = SCALE * (b[..., None] + (BETA / D) * jnp.einsum("ij,jpb->ipb", all1, e) + 1.0)
    return yy, k * e / denom


if __name__ == "__main__":
    key = jax.random.PRNGKey(0)
    k1, k2, k3 = jax.random.split(key, 3)

    # 1) exact module shape (9, 6); positive, image-like input — single-block path.
    x1 = jax.random.uniform(k1, (D, NPATCH), jnp.float32, minval=0.05, maxval=1.0)
    yy1, xim1 = layer1_forward(x1)
    jax.block_until_ready((yy1, xim1))
    yy1_ref, xim1_ref = _reference_batched(x1[..., None])
    assert jnp.allclose(yy1, yy1_ref[..., 0], rtol=1e-5, atol=1e-6)
    assert jnp.allclose(xim1, xim1_ref[..., 0], rtol=1e-4, atol=1e-4)

    # 2) small, non-128-divisible batch with an exact zero (padding path + zero->1e-6 masking).
    B2 = 37
    x2 = jax.random.uniform(k2, (D, NPATCH, B2), jnp.float32, minval=0.05, maxval=1.0)
    x2 = x2.at[0, 0, 0].set(0.0)
    yy2, xim2 = layer1_forward_batched(x2)
    jax.block_until_ready((yy2, xim2))
    yy2_ref, xim2_ref = _reference_batched(x2)
    assert jnp.allclose(yy2, yy2_ref, rtol=1e-5, atol=1e-6)
    assert jnp.allclose(xim2, xim2_ref, rtol=1e-4, atol=1e-4)

    # 3) larger batch: exercises the tiled grid path (>= 2 "parallel" tiles).
    B3 = 384
    x3 = jax.random.uniform(k3, (D, NPATCH, B3), jnp.float32, minval=0.05, maxval=1.0)
    yy3, xim3 = layer1_forward_batched(x3)
    jax.block_until_ready((yy3, xim3))
    yy3_ref, xim3_ref = _reference_batched(x3)
    assert jnp.allclose(yy3, yy3_ref, rtol=1e-5, atol=1e-6)
    assert jnp.allclose(xim3, xim3_ref, rtol=1e-4, atol=1e-4)

    print("KERNEL_OK")
</pallas_src>

<mosaic_0001>
module attributes {stable_mosaic.version = 11 : i64} {
  func.func @_layer1_kernel(%arg0: memref<9x8x128xf32, #tpu.memory_space<vmem>>, %arg1: memref<9x8x128xf32, #tpu.memory_space<vmem>>, %arg2: memref<9x8x128xf32, #tpu.memory_space<vmem>>) attributes {dimension_semantics = [], scalar_prefetch = 0 : i64, scratch_operands = 0 : i64, tpu.core_type = #tpu.core_type<tc>} {
    %c0 = arith.constant 0 : index
    %c0_0 = arith.constant 0 : index
    %c0_1 = arith.constant 0 : index
    %0 = vector.load %arg0[%c0, %c0_0, %c0_1] : memref<9x8x128xf32, #tpu.memory_space<vmem>>, vector<9x8x128xf32>
    %cst = arith.constant 0.000000e+00 : f32
    %1 = vector.broadcast %cst : f32 to vector<9x8x128xf32>
    %2 = arith.cmpf oeq, %0, %1 : vector<9x8x128xf32>
    %cst_2 = arith.constant 9.99999997E-7 : f32
    %3 = vector.broadcast %cst_2 : f32 to vector<9x8x128xf32>
    %4 = arith.select %2, %3, %0 : vector<9x8x128xi1>, vector<9x8x128xf32>
    %5 = math.log %4 : vector<9x8x128xf32>
    %cst_3 = arith.constant 1.300000e+00 : f32
    %6 = vector.broadcast %cst_3 : f32 to vector<9x8x128xf32>
    %7 = arith.mulf %6, %5 : vector<9x8x128xf32>
    %8 = math.exp %7 : vector<9x8x128xf32>
    %cst_4 = arith.constant dense<0.000000e+00> : vector<8x128xf32>
    %9 = vector.multi_reduction <add>, %8, %cst_4 [0] : vector<9x8x128xf32> to vector<8x128xf32>
    %10 = vector.shape_cast %9 : vector<8x128xf32> to vector<1x8x128xf32>
    %cst_5 = arith.constant 2.222000e-01 : f32
    %11 = vector.broadcast %cst_5 : f32 to vector<1x8x128xf32>
    %12 = arith.mulf %11, %10 : vector<1x8x128xf32>
    %cst_6 = arith.constant 0.00999999977 : f32
    %13 = vector.broadcast %cst_6 : f32 to vector<1x8x128xf32>
    %14 = arith.addf %13, %12 : vector<1x8x128xf32>
    %15 = vector.broadcast %14 : vector<1x8x128xf32> to vector<9x8x128xf32>
    %16 = arith.addf %15, %8 : vector<9x8x128xf32>
    %cst_7 = arith.constant 0.222222224 : f32
    %17 = vector.broadcast %cst_7 : f32 to vector<1x8x128xf32>
    %18 = arith.mulf %17, %10 : vector<1x8x128xf32>
    %cst_8 = arith.constant 1.010000e+00 : f32
    %19 = vector.broadcast %cst_8 : f32 to vector<1x8x128xf32>
    %20 = arith.addf %19, %18 : vector<1x8x128xf32>
    %cst_9 = arith.constant 2.550000e+02 : f32
    %21 = vector.broadcast %cst_9 : f32 to vector<1x8x128xf32>
    %22 = arith.mulf %21, %20 : vector<1x8x128xf32>
    %23 = tpu.reciprocal %16 {approx = true} : vector<9x8x128xf32> -> vector<9x8x128xf32>
    %24 = arith.mulf %16, %23 : vector<9x8x128xf32>
    %cst_10 = arith.constant 2.000000e+00 : f32
    %25 = vector.broadcast %cst_10 : f32 to vector<9x8x128xf32>
    %26 = arith.subf %25, %24 : vector<9x8x128xf32>
    %27 = arith.mulf %23, %26 : vector<9x8x128xf32>
    %c0_11 = arith.constant 0 : index
    %c0_12 = arith.constant 0 : index
    %c0_13 = arith.constant 0 : index
    %28 = vector.load %arg1[%c0_11, %c0_12, %c0_13] : memref<9x8x128xf32, #tpu.memory_space<vmem>>, vector<9x8x128xf32>
    tpu.vector_store %arg1[%c0_11, %c0_12, %c0_13], %4 {strides = array<i32>} : memref<9x8x128xf32, #tpu.memory_space<vmem>>, vector<9x8x128xf32>,
    %29 = vector.broadcast %22 : vector<1x8x128xf32> to vector<9x8x128xf32>
    %30 = arith.mulf %29, %8 : vector<9x8x128xf32>
    %31 = arith.mulf %30, %27 : vector<9x8x128xf32>
    %c0_14 = arith.constant 0 : index
    %c0_15 = arith.constant 0 : index
    %c0_16 = arith.constant 0 : index
    %32 = vector.load %arg2[%c0_14, %c0_15, %c0_16] : memref<9x8x128xf32, #tpu.memory_space<vmem>>, vector<9x8x128xf32>
    tpu.vector_store %arg2[%c0_14, %c0_15, %c0_16], %31 {strides = array<i32>} : memref<9x8x128xf32, #tpu.memory_space<vmem>>, vector<9x8x128xf32>,
    return
  }
}

</mosaic_0001>

<bundles_post_ra>
// kernel: tpu_custom_call.1
= control target key start
LH: loop header
LB: loop body
LE: loop exit
PB: predicated region body
PF: predicated region fallthrough
CT: control target
= control target key end

     0   :  { %8 = vsyncpa [#allocation3], 0  ;;  %s434_s0 = inlined_call_operand.hbm [shape: f32[9,8,128], index: 0, kind: input, shape index: {}]   ;;  %s435_s1 = inlined_call_operand.hbm [shape: f32[9,8,128], index: 1, kind: output, shape index: {0}]   ;;  %s436_s2 = inlined_call_operand.hbm [shape: f32[9,8,128], index: 2, kind: output, shape index: {1}]  }
   0x1   :  { %9 = vsyncpa [#allocation4], 0 }
   0x2   :  { %10 = vsyncpa [#allocation7], 0  ;;  %s356_s9 = smov [#allocation2]   ;;  %s284_s13 = scalar_lea.hbm %s434_s0, 1152 }
   0x3   :  { %s16_s10 = sshll.u32 %s356_s9, 4  ;;  %p285_p0 = scmp.ne.s32.totalorder %s434_s0, %s284_s13  ;;  %s17_s10 = int_to_ptr.vmem [resolvable:$true] %s16_s10 }
   0x4   :  { %p288_p1 = scmp.lt.u32.totalorder %s284_s13, %s434_s0 }
   0x6   :  { %p290_p2 = pnand %p288_p1, %p285_p0 }
   0x8   :  { %293 = shalt.err (!%p290_p2)
}
   0x9   :  { %s294_s18 = scalar_lea.vmem %s17_s10, 1152  ;;  %p299_p4 = scmp.lt.s32.totalorder %s17_s10, %s17_s10 }
   0xa   :  { %p295_p3 = scmp.ne.s32.totalorder %s17_s10, %s294_s18  ;;  %p300_p5 = scmp.lt.s32.totalorder %s294_s18, %s294_s18 }
   0xc   :  { %p301_p6 = por %p300_p5, %p299_p4 }
   0xe   :  { %p302_p7 = pnand %p301_p6, %p295_p3 }
  0x10   :  { %305 = shalt.err (!%p302_p7)
}
  0x11   :  { %s357_s19 = smov 128   ;;  %s358_s20 = smov 8  }
  0x12   :  { %22 = dma.hbm_to_vmem [thread:$0]  %s434_s0, 1152, %s17_s10, [#allocation3], %s357_s19, %s357_s19, %s358_s20  }
  0x13   :  { %350 = dma.done.wait [#allocation3], 1152  }
  0x14   :  { %351 = vsyncadd [#allocation3], 4294966144  ;;  %v26_v0 = vld [vmem:[#allocation2] sm:$0xff]  ;;  %v27_v1 = vld [vmem:[#allocation2 + $0x8] sm:$0xff]  ;;  %s359_s23 = smov [#allocation5]  }
  0x15   :  { %v28_v2 = vld [vmem:[#allocation2 + $0x10] sm:$0xff]  ;;  %s391_s24 = sshll.u32 %s359_s23, 4  ;;  %vm35_vm0 = vcmp.eq.f32.partialorder %v26_v0, 0.0  ;;  %vm36_vm1 = vcmp.eq.f32.partialorder %v27_v1, 0.0  ;;  %v29_v3 = vld [vmem:[#allocation2 + $0x18] sm:$0xff]  ;;  %v30_v4 = vld [vmem:[#allocation2 + $0x20] sm:$0xff]  ;;  %s198_s24 = int_to_ptr.vmem [resolvable:$true] %s391_s24 }
  0x16   :  { %vm37_vm2 = vcmp.eq.f32.partialorder %v28_v2, 0.0  ;;  %v31_v5 = vld [vmem:[#allocation2 + $0x28] sm:$0xff]  ;;  %v44_v6 = vsel %vm35_vm0, 1e-06, %v26_v0  ;;  %v45_v7 = vsel %vm36_vm1, 1e-06, %v27_v1  ;;  %p311_p9 = scmp.lt.s32.totalorder %s198_s24, %s198_s24 }
  0x17   :  { %v46_v8 = vsel %vm37_vm2, 1e-06, %v28_v2  ;;  %230 = vlog2.f32 %v44_v6  ;;  %156 = vst [vmem:[#allocation5] sm:$0xff] %v44_v6  ;;  %157 = vst [vmem:[#allocation5 + $0x8] sm:$0xff] %v45_v7  ;;  %vm38_vm3 = vcmp.eq.f32.partialorder %v29_v3, 0.0  ;;  %vm39_vm4 = vcmp.eq.f32.partialorder %v30_v4, 0.0 }
  0x18   :  { %158 = vst [vmem:[#allocation5 + $0x10] sm:$0xff] %v46_v8  ;;  %vm40_vm5 = vcmp.eq.f32.partialorder %v31_v5, 0.0  ;;  %v32_v9 = vld [vmem:[#allocation2 + $0x30] sm:$0xff]  ;;  %v33_v10 = vld [vmem:[#allocation2 + $0x38] sm:$0xff]  ;;  %v34_v11 = vld [vmem:[#allocation2 + $0x40] sm:$0xff]  ;;  %232 = vlog2.f32 %v45_v7  ;;  %s306_s0 = scalar_lea.vmem %s198_s24, 1152 }
  0x19   :  { %v47_v12 = vsel %vm38_vm3, 1e-06, %v29_v3  ;;  %v48_v13 = vsel %vm39_vm4, 1e-06, %v30_v4  ;;  %v49_v14 = vsel %vm40_vm5, 1e-06, %v31_v5  ;;  %234 = vlog2.f32 %v46_v8  ;;  %p307_p8 = scmp.ne.s32.totalorder %s198_s24, %s306_s0  ;;  %p312_p10 = scmp.lt.s32.totalorder %s306_s0, %s306_s0 }
  0x1a   :  { %159 = vst [vmem:[#allocation5 + $0x18] sm:$0xff] %v47_v12  ;;  %160 = vst [vmem:[#allocation5 + $0x20] sm:$0xff] %v48_v13  ;;  %vm41_vm6 = vcmp.eq.f32.partialorder %v32_v9, 0.0  ;;  %vm42_vm7 = vcmp.eq.f32.partialorder %v33_v10, 0.0  ;;  %vm43_vm8 = vcmp.eq.f32.partialorder %v34_v11, 0.0  ;;  %236 = vlog2.f32 %v47_v12 }
  0x1b   :  { %161 = vst [vmem:[#allocation5 + $0x28] sm:$0xff] %v49_v14  ;;  %v50_v15 = vsel %vm41_vm6, 1e-06, %v32_v9  ;;  %v51_v16 = vsel %vm42_vm7, 1e-06, %v33_v10  ;;  %238 = vlog2.f32 %v48_v13  ;;  %p313_p11 = por %p312_p10, %p311_p9 }
  0x1c   :  { %v52_v17 = vsel %vm43_vm8, 1e-06, %v34_v11  ;;  %162 = vst [vmem:[#allocation5 + $0x30] sm:$0xff] %v50_v15  ;;  %163 = vst [vmem:[#allocation5 + $0x38] sm:$0xff] %v51_v16  ;;  %240 = vlog2.f32 %v49_v14 }
  0x1d   :  { %164 = vst [vmem:[#allocation5 + $0x40] sm:$0xff] %v52_v17  ;;  %p314_p12 = pnand %p313_p11, %p307_p8 }
  0x1f   :  { %317 = shalt.err (!%p314_p12)
}
  0x20   :  { %s318_s27 = scalar_lea.hbm %s435_s1, 1152 }
  0x21   :  { %p319_p13 = scmp.ne.s32.totalorder %s435_s1, %s318_s27  ;;  %p322_p0 = scmp.lt.u32.totalorder %s318_s27, %s435_s1 }
  0x23   :  { %p324_p1 = pnand %p322_p0, %p319_p13 }
  0x25   :  { %327 = shalt.err (!%p324_p1)
}
  0x26   :  { %203 = dma.vmem_to_hbm [thread:$0]  %s198_s24, 1152, %s435_s1, [#allocation4], %s357_s19, %s357_s19, %s358_s20   ;;  %242 = vlog2.f32 %v50_v15  ;;  %v231_v18 = vpop.eup %230 }
  0x27   :  { %244 = vlog2.f32 %v51_v16  ;;  %v233_v19 = vpop.eup %232  ;;  %v54_v20 = vmul.f32 0.6931472, %v231_v18  ;;  %s360_s1 = smov [#allocation6]  }
  0x28   :  { %246 = vlog2.f32 %v52_v17  ;;  %v235_v21 = vpop.eup %234  ;;  %v56_v22 = vmul.f32 0.6931472, %v233_v19  ;;  %s209_s6 = sshll.u32 %s360_s1, 4  ;;  %s210_s6 = int_to_ptr.vmem [resolvable:$true] %s209_s6 }
  0x29   :  { %v237_v23 = vpop.eup %236  ;;  %v71_v24 = vmul.f32 1.3, %v54_v20  ;;  %v58_v25 = vmul.f32 0.6931472, %v235_v21  ;;  %s328_s7 = scalar_lea.vmem %s210_s6, 1152  ;;  %p333_p3 = scmp.lt.s32.totalorder %s210_s6, %s210_s6 }
  0x2a   :  { %v239_v26 = vpop.eup %238  ;;  %v72_v27 = vmul.f32 1.3, %v56_v22  ;;  %v60_v28 = vmul.f32 0.6931472, %v237_v23  ;;  %p329_p2 = scmp.ne.s32.totalorder %s210_s6, %s328_s7  ;;  %p334_p4 = scmp.lt.s32.totalorder %s328_s7, %s328_s7 }
  0x2b   :  { %v241_v29 = vpop.eup %240  ;;  %v80_v30 = vmul.f32 1.442695, %v71_v24  ;;  %v73_v31 = vmul.f32 1.3, %v58_v25  ;;  %v62_v32 = vmul.f32 0.6931472, %v239_v26 }
  0x2c   :  { %v82_v34 = vmul.f32 1.442695, %v72_v27  ;;  %v74_v35 = vmul.f32 1.3, %v60_v28  ;;  %v64_v36 = vmul.f32 0.6931472, %v241_v29  ;;  %p335_p5 = por %p334_p4, %p333_p3 }
  0x2d   :  { %248 = vpow2.f32 %v80_v30  ;;  %v84_v38 = vmul.f32 1.442695, %v73_v31  ;;  %v75_v39 = vmul.f32 1.3, %v62_v32 }
  0x2e   :  { %250 = vpow2.f32 %v82_v34  ;;  %v86_v42 = vmul.f32 1.442695, %v74_v35  ;;  %v76_v43 = vmul.f32 1.3, %v64_v36  ;;  %p336_p6 = pnand %p335_p5, %p329_p2 }
  0x2f   :  { %252 = vpow2.f32 %v84_v38  ;;  %v88_v45 = vmul.f32 1.442695, %v75_v39 }
  0x30   :  { %v243_v33 = vpop.eup %242  ;;  %254 = vpow2.f32 %v86_v42  ;;  %v90_v48 = vmul.f32 1.442695, %v76_v43 }
  0x31   :  { %v245_v37 = vpop.eup %244  ;;  %v66_v40 = vmul.f32 0.6931472, %v243_v33  ;;  %256 = vpow2.f32 %v88_v45 }
  0x32   :  { %v247_v41 = vpop.eup %246  ;;  %v68_v44 = vmul.f32 0.6931472, %v245_v37  ;;  %258 = vpow2.f32 %v90_v48 }
  0x33   :  { %v77_v46 = vmul.f32 1.3, %v66_v40  ;;  %v70_v47 = vmul.f32 0.6931472, %v247_v41 }
  0x34   :  { %v78_v49 = vmul.f32 1.3, %v68_v44 }
  0x35   :  { %v92_v50 = vmul.f32 1.442695, %v77_v46  ;;  %v79_v51 = vmul.f32 1.3, %v70_v47 }
  0x36   :  { %v94_v52 = vmul.f32 1.442695, %v78_v49 }
  0x37   :  { %260 = vpow2.f32 %v92_v50  ;;  %v96_v53 = vmul.f32 1.442695, %v79_v51  ;;  %v249_v54 = vpop.eup %248 }
  0x38   :  { %v251_v55 = vpop.eup %250  ;;  %262 = vpow2.f32 %v94_v52 }
  0x39   :  { %v253_v56 = vpop.eup %252  ;;  %v98_v57 = vadd.f32 %v251_v55, %v249_v54  ;;  %264 = vpow2.f32 %v96_v53 }
  0x3a   :  { %v255_v58 = vpop.eup %254 }
  0x3b   :  { %v99_v59 = vadd.f32 %v253_v56, %v98_v57  ;;  %v257_v60 = vpop.eup %256 }
  0x3c   :  { %v259_v62 = vpop.eup %258 }
  0x3d   :  { %v100_v61 = vadd.f32 %v255_v58, %v99_v59 }
  0x3f   :  { %v101_v63 = vadd.f32 %v257_v60, %v100_v61 }
  0x41   :  { %v261_v0 = vpop.eup %260  ;;  %v102_v1 = vadd.f32 %v259_v62, %v101_v63 }
  0x42   :  { %v409_v2 = vpop.eup %262 }
  0x43   :  { %v103_v3 = vadd.f32 %v261_v0, %v102_v1  ;;  %v411_v4 = vpop.eup %264 }
  0x45   :  { %v104_v5 = vadd.f32 %v409_v2, %v103_v3 }
  0x47   :  { %v105_v6 = vadd.f32 %v411_v4, %v104_v5 }
  0x49   :  { %v106_v7 = vmul.f32 0.2222, %v105_v6  ;;  %v117_v13 = vmul.f32 0.22222222, %v105_v6 }
  0x4b   :  { %v107_v8 = vadd.f32 0.01, %v106_v7  ;;  %v118_v18 = vadd.f32 1.01, %v117_v13 }
  0x4d   :  { %v108_v9 = vadd.f32 %v249_v54, %v107_v8  ;;  %v109_v10 = vadd.f32 %v251_v55, %v107_v8  ;;  %v110_v11 = vadd.f32 %v253_v56, %v107_v8  ;;  %v111_v12 = vadd.f32 %v255_v58, %v107_v8 }
  0x4e   :  { %v112_v14 = vadd.f32 %v257_v60, %v107_v8  ;;  %v113_v15 = vadd.f32 %v259_v62, %v107_v8  ;;  %v114_v16 = vadd.f32 %v261_v0, %v107_v8  ;;  %v115_v17 = vadd.f32 %v409_v2, %v107_v8 }
  0x4f   :  { %266 = vrcp.f32 %v108_v9  ;;  %v116_v19 = vadd.f32 %v411_v4, %v107_v8  ;;  %v119_v20 = vmul.f32 255.0, %v118_v18 }
  0x50   :  { %268 = vrcp.f32 %v109_v10 }
  0x51   :  { %270 = vrcp.f32 %v110_v11  ;;  %v165_v25 = vmul.f32 %v249_v54, %v119_v20  ;;  %v166_v29 = vmul.f32 %v251_v55, %v119_v20  ;;  %v167_v31 = vmul.f32 %v253_v56, %v119_v20 }
  0x52   :  { %272 = vrcp.f32 %v111_v12  ;;  %v168_v35 = vmul.f32 %v255_v58, %v119_v20  ;;  %v169_v36 = vmul.f32 %v257_v60, %v119_v20  ;;  %v170_v41 = vmul.f32 %v259_v62, %v119_v20 }
  0x53   :  { %274 = vrcp.f32 %v112_v14  ;;  %v171_v46 = vmul.f32 %v261_v0, %v119_v20  ;;  %v172_v0 = vmul.f32 %v409_v2, %v119_v20  ;;  %v173_v6 = vmul.f32 %v411_v4, %v119_v20 }
  0x54   :  { %276 = vrcp.f32 %v113_v15 }
  0x55   :  { %278 = vrcp.f32 %v114_v16 }
  0x56   :  { %280 = vrcp.f32 %v115_v17 }
  0x57   :  { %282 = vrcp.f32 %v116_v19 }
  0x59   :  { %v267_v21 = vpop.eup %266 }
  0x5a   :  { %v269_v22 = vpop.eup %268  ;;  %v129_v23 = vmul.f32 %v267_v21, %v108_v9 }
  0x5b   :  { %v271_v24 = vpop.eup %270  ;;  %v130_v26 = vmul.f32 %v269_v22, %v109_v10 }
  0x5c   :  { %v273_v27 = vpop.eup %272  ;;  %v138_v28 = vsub.f32 2.0, %v129_v23  ;;  %v131_v30 = vmul.f32 %v271_v24, %v110_v11 }
  0x5d   :  { %v275_v32 = vpop.eup %274  ;;  %v139_v33 = vsub.f32 2.0, %v130_v26  ;;  %v132_v34 = vmul.f32 %v273_v27, %v111_v12 }
  0x5e   :  { %v277_v37 = vpop.eup %276  ;;  %v147_v38 = vmul.f32 %v267_v21, %v138_v28  ;;  %v140_v39 = vsub.f32 2.0, %v131_v30  ;;  %v133_v40 = vmul.f32 %v275_v32, %v112_v14 }
  0x5f   :  { %v279_v42 = vpop.eup %278  ;;  %v148_v43 = vmul.f32 %v269_v22, %v139_v33  ;;  %v141_v44 = vsub.f32 2.0, %v132_v34  ;;  %v134_v45 = vmul.f32 %v277_v37, %v113_v15 }
  0x60   :  { %v281_v47 = vpop.eup %280  ;;  %v174_v48 = vmul.f32 %v165_v25, %v147_v38  ;;  %v149_v49 = vmul.f32 %v271_v24, %v140_v39  ;;  %v142_v50 = vsub.f32 2.0, %v133_v40  ;;  %v135_v51 = vmul.f32 %v279_v42, %v114_v16 }
  0x61   :  { %v283_v52 = vpop.eup %282  ;;  %v175_v53 = vmul.f32 %v166_v29, %v148_v43  ;;  %v150_v54 = vmul.f32 %v273_v27, %v141_v44  ;;  %v143_v55 = vsub.f32 2.0, %v134_v45  ;;  %v136_v56 = vmul.f32 %v281_v47, %v115_v17 }
  0x62   :  { %183 = vst [vmem:[#allocation6] sm:$0xff] %v174_v48  ;;  %v176_v57 = vmul.f32 %v167_v31, %v149_v49  ;;  %v151_v58 = vmul.f32 %v275_v32, %v142_v50  ;;  %v144_v59 = vsub.f32 2.0, %v135_v51  ;;  %v137_v60 = vmul.f32 %v283_v52, %v116_v19 }
  0x63   :  { %184 = vst [vmem:[#allocation6 + $0x8] sm:$0xff] %v175_v53  ;;  %v177_v61 = vmul.f32 %v168_v35, %v150_v54  ;;  %v152_v62 = vmul.f32 %v277_v37, %v143_v55  ;;  %v145_v63 = vsub.f32 2.0, %v136_v56 }
  0x64   :  { %185 = vst [vmem:[#allocation6 + $0x10] sm:$0xff] %v176_v57  ;;  %v178_v1 = vmul.f32 %v169_v36, %v151_v58  ;;  %v153_v3 = vmul.f32 %v279_v42, %v144_v59  ;;  %v146_v5 = vsub.f32 2.0, %v137_v60 }
  0x65   :  { %186 = vst [vmem:[#allocation6 + $0x18] sm:$0xff] %v177_v61  ;;  %v179_v7 = vmul.f32 %v170_v41, %v152_v62  ;;  %v154_v8 = vmul.f32 %v281_v47, %v145_v63 }
  0x66   :  { %187 = vst [vmem:[#allocation6 + $0x20] sm:$0xff] %v178_v1  ;;  %v180_v9 = vmul.f32 %v171_v46, %v153_v3  ;;  %v155_v10 = vmul.f32 %v283_v52, %v146_v5 }
  0x67   :  { %188 = vst [vmem:[#allocation6 + $0x28] sm:$0xff] %v179_v7  ;;  %v181_v11 = vmul.f32 %v172_v0, %v154_v8 }
  0x68   :  { %189 = vst [vmem:[#allocation6 + $0x30] sm:$0xff] %v180_v9  ;;  %v182_v12 = vmul.f32 %v173_v6, %v155_v10 }
  0x69   :  { %190 = vst [vmem:[#allocation6 + $0x38] sm:$0xff] %v181_v11 }
  0x6a   :  { %191 = vst [vmem:[#allocation6 + $0x40] sm:$0xff] %v182_v12 }
  0x6b   :  { %339 = shalt.err (!%p336_p6)
}
  0x6c   :  { %s340_s10 = scalar_lea.hbm %s436_s2, 1152 }
  0x6d   :  { %p341_p7 = scmp.ne.s32.totalorder %s436_s2, %s340_s10  ;;  %p344_p8 = scmp.lt.u32.totalorder %s340_s10, %s436_s2 }
  0x6f   :  { %p346_p9 = pnand %p344_p8, %p341_p7 }
  0x71   :  { %349 = shalt.err (!%p346_p9)
}
  0x72   :  { %215 = dma.vmem_to_hbm [thread:$0]  %s210_s6, 1152, %s436_s2, [#allocation7], %s357_s19, %s357_s19, %s358_s20  }
  0x73   :  { %352 = dma.done.wait [#allocation4], 1152  }
  0x74   :  { %353 = vsyncadd [#allocation4], 4294966144 }
  0x75   :  { %354 = dma.done.wait [#allocation7], 1152  }
  0x76   :  { %355 = vsyncadd [#allocation7], 4294966144 }
  0x77   :  { %222 = vsyncpa [#allocation3], 1 }
  0x78   :  { %223 = vsyncpa [#allocation4], 1 }
  0x79   :  { %224 = vsyncpa [#allocation7], 1 }

</bundles_post_ra>
